<compile_context>
chip_gen: v6e
topology: v6e:2x2x1
jax: 0.10.0
libtpu: 0.0.40
codegen_flags: <defaults>
</compile_context>

<pallas_src>
import jax
import jax.numpy as jnp
import numpy as np
from jax.experimental import pallas as pl
from jax.experimental.pallas import tpu as pltpu

THRESHOLD = 5.0


def _round_up(v, m):
    return (v + m - 1) // m * m


def _cdiv(a, b):
    return -(-a // b)


def _vmem_capacity_bytes():
    """Generation-aware VMEM capacity (128 MiB on v5e/v6e, 64 MiB per core on v7x)."""
    try:
        info = pltpu.get_tpu_info()
    except Exception:
        return 64 << 20
    for name in ("vmem_capacity_bytes", "vmem_size_bytes", "vmem_bytes"):
        val = getattr(info, name, None)
        if val:
            return int(val)
    return 64 << 20


def _make_kernel(thr2, LP, KP):
    """thr2 = threshold**2; LP/KP are lane-padded L and K (multiples of 128)."""

    def kernel(x_ref, cs_ref, w_ref, b_ref, o_ref, z_ref):
        x = x_ref[...]                                                      # (TM, LP)

        # Fused real-input DFT over the first K bins: [re | s] = x @ [cos | sin].
        # Kept f32 (never bf16): the threshold decision below is discontinuous.
        rs = jnp.dot(x, cs_ref[...], preferred_element_type=jnp.float32)   # (TM, 2*KP)
        re = rs[:, :KP]        # Re(X_k)             (128-aligned slice)
        s = rs[:, KP:]         # x @ sin = -Im(X_k)  (128-aligned slice)

        # Amplitude filter: |X_k|^2 > thr^2 (padded bins give 0 > thr2 == False).
        keep = (re * re + s * s) > thr2

        # Stack [x | re_f | s_f] so the inverse DFT and both linear heads fuse
        # into a single matmul with contraction width LP + 2*KP.
        z_ref[:, :LP] = x
        z_ref[:, LP:LP + KP] = jnp.where(keep, re, 0.0)
        z_ref[:, LP + KP:] = jnp.where(keep, s, 0.0)

        o_ref[...] = (jnp.dot(z_ref[...], w_ref[...],
                              preferred_element_type=jnp.float32)
                      + b_ref[...])

    return kernel


def make_afilter_fn(params, threshold=THRESHOLD):
    """Precompute (once) the DFT / fused-head matrices and return a jitted apply fn.

    params: w_season/w_trend (P, L), b_season/b_trend (P,).
    Returned fn maps x (B, seq_len, C) float32 -> (B, pred_len, C) float32.
    """
    ws = np.asarray(params["w_season"], dtype=np.float64)     # (P, L)
    wt = np.asarray(params["w_trend"], dtype=np.float64)      # (P, L)
    bs = np.asarray(params["b_season"], dtype=np.float64)     # (P,)
    bt = np.asarray(params["b_trend"], dtype=np.float64)      # (P,)
    P, L = ws.shape
    K = L // 2 + 1

    LP = _round_up(L, 128)
    KP = _round_up(K, 128)   # keep each DFT half lane-aligned -> free in-kernel slices
    PP = _round_up(P, 128)
    ZW = LP + 2 * KP         # contraction width of the fused head matmul

    # ---- host-side (numpy, f64) precompute: done ONCE here, not per call ----
    n = np.arange(L)
    k = np.arange(K)
    ang = 2.0 * np.pi * np.outer(n, k) / L                    # (L, K)
    cosm = np.cos(ang)
    sinm = np.sin(ang)

    # rFFT symmetry: non-DC / non-Nyquist bins count twice in the inverse.
    w = np.full(K, 2.0)
    w[0] = 1.0
    if L % 2 == 0:
        w[-1] = 1.0

    wd_t = (wt - ws).T                                        # (L, P)
    cd = (w[:, None] / L) * (cosm.T @ wd_t)                   # (K, P)
    sd = (w[:, None] / L) * (sinm.T @ wd_t)                   # (K, P) (+ sign pairs with s = -Im)
    bias = (bs + bt).reshape(1, P)

    cs = np.zeros((LP, 2 * KP), dtype=np.float32)             # [cos | sin]
    cs[:L, :K] = cosm
    cs[:L, KP:KP + K] = sinm

    wstack = np.zeros((ZW, PP), dtype=np.float32)             # [Ws^T ; Cd ; Sd]
    wstack[:L, :P] = ws.T
    wstack[LP:LP + K, :P] = cd
    wstack[LP + KP:LP + KP + K, :P] = sd

    b_pad = np.zeros((1, PP), dtype=np.float32)
    b_pad[0, :P] = bias

    cs_d = jnp.asarray(cs)
    w_d = jnp.asarray(wstack)
    b_d = jnp.asarray(b_pad)

    kernel = _make_kernel(float(threshold) ** 2, LP, KP)

    @jax.jit
    def _apply(x_batch, cs_m, w_m, b_m):
        B, Lx, C = x_batch.shape
        assert Lx == L, f"expected seq_len={L}, got {Lx}"
        M = B * C
        M8 = _round_up(max(M, 1), 8)

        # ---- generation-aware VMEM budget / tile-size selection ----
        vmem_cap = _vmem_capacity_bytes()
        budget = max(vmem_cap - (12 << 20), vmem_cap // 2)
        # resident constant-index operands (double-buffered by the pipeliner -> 2x)
        resident = 4 * 2 * (LP * 2 * KP + ZW * PP + 8 * PP)
        # per-M-row bytes: x tile (2x), out tile (2x), z scratch (1x), DFT temp rs
        per_row = 4 * (2 * LP + 2 * PP + ZW + 2 * KP)
        if resident + 8 * per_row > budget:
            # TODO(synk): add a K/P-tiled (accumulator) fallback for very large seq_len/pred_len.
            raise NotImplementedError(
                f"resident DFT/head matrices ({resident / 2**20:.1f} MiB) exceed the VMEM "
                f"budget ({budget / 2**20:.1f} MiB); seq_len/pred_len too large for this path.")

        tm_cap = (budget - resident) // per_row
        tm_cap = max(8, min(2048, (tm_cap // 8) * 8))
        # >=2 (even) grid steps when M allows, so ("parallel",) actually splits the
        # row dimension across v7x's two TensorCores; at most one spare padded tile.
        min_steps = 2 if M8 >= 16 else 1
        steps = max(min_steps, _cdiv(M8, tm_cap))
        if steps > 1 and steps % 2:
            steps += 1
        tm = _round_up(_cdiv(M8, steps), 8)
        steps = max(min_steps, _cdiv(M8, tm))
        if steps > 1 and steps % 2:
            steps += 1
        m_pad = tm * steps

        vmem_limit = int(min(resident + tm * per_row + (8 << 20), vmem_cap))

        # (B, L, C) -> (B, C, L) -> (M, L) -> zero-pad to (m_pad, LP).
        # Jitted, so transpose/reshape/pad fuse into one pre-pass over x.
        x2d = jnp.transpose(x_batch, (0, 2, 1)).reshape(M, L).astype(jnp.float32)
        x2d = jnp.pad(x2d, ((0, m_pad - M), (0, LP - L)))

        flops = 2 * m_pad * LP * (2 * KP) + 2 * m_pad * ZW * PP
        bytes_accessed = 4 * (m_pad * LP + m_pad * PP + LP * 2 * KP + ZW * PP + PP)

        out_pad = pl.pallas_call(
            kernel,
            out_shape=jax.ShapeDtypeStruct((m_pad, PP), jnp.float32),
            grid_spec=pltpu.PrefetchScalarGridSpec(
                num_scalar_prefetch=0,
                grid=(m_pad // tm,),
                in_specs=[
                    pl.BlockSpec((tm, LP), lambda i: (i, 0)),       # x tile (pipelined)
                    pl.BlockSpec((LP, 2 * KP), lambda i: (0, 0)),   # [cos|sin]     (resident)
                    pl.BlockSpec((ZW, PP), lambda i: (0, 0)),       # [Ws^T;Cd;Sd]  (resident)
                    pl.BlockSpec((1, PP), lambda i: (0, 0)),        # bs + bt
                ],
                out_specs=pl.BlockSpec((tm, PP), lambda i: (i, 0)),
                scratch_shapes=[pltpu.VMEM((tm, ZW), jnp.float32)],
            ),
            compiler_params=pltpu.CompilerParams(
                dimension_semantics=("parallel",),
                vmem_limit_bytes=vmem_limit),
            cost_estimate=pl.CostEstimate(
                flops=flops, transcendentals=0, bytes_accessed=bytes_accessed),
        )(x2d, cs_m, w_m, b_m)

        # strip padding: (m_pad, PP) -> (M, P) -> (B, C, P) -> (B, P, C)
        out2d = out_pad[:M, :P]
        return jnp.transpose(out2d.reshape(B, C, P), (0, 2, 1))

    def apply(x_batch):
        return _apply(x_batch, cs_d, w_d, b_d)

    return apply


def afilter_fft_dlinear(x_batch, params, threshold=THRESHOLD):
    """One-shot convenience wrapper (precompute is NOT cached across calls)."""
    return make_afilter_fn(params, threshold)(x_batch)


def reference(x_batch, params, threshold=THRESHOLD):
    """Pure-JAX reference mirroring the PyTorch module."""
    x = jnp.transpose(x_batch, (0, 2, 1))                      # (B, C, L)
    xf = jnp.fft.fft(x, axis=-1)
    xf_f = jnp.where(jnp.abs(xf) > threshold, xf, 0.0)
    trend = jnp.fft.ifft(xf_f, axis=-1).real.astype(jnp.float32)
    season = x - trend
    y = (season @ params["w_season"].T + params["b_season"]
         + trend @ params["w_trend"].T + params["b_trend"])
    return jnp.transpose(y, (0, 2, 1))


if __name__ == "__main__":
    B, C, seq_len, pred_len = 2, 4, 16, 8

    key = jax.random.PRNGKey(0)
    k_x, k_ws, k_bs, k_wt, k_bt = jax.random.split(key, 5)

    bound = 1.0 / np.sqrt(seq_len)   # nn.Linear default init range
    params = {
        "w_season": jax.random.uniform(k_ws, (pred_len, seq_len), jnp.float32, -bound, bound),
        "b_season": jax.random.uniform(k_bs, (pred_len,), jnp.float32, -bound, bound),
        "w_trend":  jax.random.uniform(k_wt, (pred_len, seq_len), jnp.float32, -bound, bound),
        "b_trend":  jax.random.uniform(k_bt, (pred_len,), jnp.float32, -bound, bound),
    }

    x_batch = jax.random.normal(k_x, (B, seq_len, C), jnp.float32)

    model_fn = make_afilter_fn(params)           # host precompute happens once here
    y = jax.block_until_ready(model_fn(x_batch))

    y_ref = jax.block_until_ready(reference(x_batch, params))
    assert y.shape == (B, pred_len, C)
    np.testing.assert_allclose(np.asarray(y), np.asarray(y_ref), rtol=1e-4, atol=1e-4)

    print("KERNEL_OK")
</pallas_src>

<mosaic_0001>
module attributes {stable_mosaic.version = 11 : i64} {
  func.func @kernel(%arg0: i32, %arg1: memref<8x128xf32, #tpu.memory_space<vmem>>, %arg2: memref<128x256xf32, #tpu.memory_space<vmem>>, %arg3: memref<384x128xf32, #tpu.memory_space<vmem>>, %arg4: memref<1x128xf32, #tpu.memory_space<vmem>>, %arg5: memref<8x128xf32, #tpu.memory_space<vmem>>, %arg6: memref<8x384xf32, #tpu.memory_space<vmem>>) attributes {dimension_semantics = [#tpu.dimension_semantics<parallel>], iteration_bounds = array<i64: 1>, scalar_prefetch = 0 : i64, scratch_operands = 1 : i64, tpu.core_type = #tpu.core_type<tc>, window_params = [{transform_indices = @transform_0, window_bounds = array<i64: 8, 128>}, {pipeline_mode = #tpu.pipeline_mode<synchronous>, transform_indices = @transform_1, window_bounds = array<i64: 128, 256>}, {pipeline_mode = #tpu.pipeline_mode<synchronous>, transform_indices = @transform_2, window_bounds = array<i64: 384, 128>}, {pipeline_mode = #tpu.pipeline_mode<synchronous>, transform_indices = @transform_3, window_bounds = array<i64: 1, 128>}, {transform_indices = @transform_4, window_bounds = array<i64: 8, 128>}]} {
    %c0 = arith.constant 0 : index
    %c0_0 = arith.constant 0 : index
    %0 = vector.load %arg1[%c0, %c0_0] : memref<8x128xf32, #tpu.memory_space<vmem>>, vector<8x128xf32>
    %c0_1 = arith.constant 0 : index
    %c0_2 = arith.constant 0 : index
    %1 = vector.load %arg2[%c0_1, %c0_2] : memref<128x256xf32, #tpu.memory_space<vmem>>, vector<128x256xf32>
    %cst = arith.constant dense<0.000000e+00> : vector<8x256xf32>
    %2 = tpu.matmul %0, %1, %cst {dimension_numbers = #tpu.dot_dimension_numbers<[1], [0], [0], [1], [0, 0, 1, 1], [], []>} : vector<8x128xf32>, vector<128x256xf32>, vector<8x256xf32> -> vector<8x256xf32>
    %3 = vector.extract_strided_slice %2 {offsets = [0, 0], sizes = [8, 128], strides = [1, 1]} : vector<8x256xf32> to vector<8x128xf32>
    %4 = vector.extract_strided_slice %2 {offsets = [0, 128], sizes = [8, 128], strides = [1, 1]} : vector<8x256xf32> to vector<8x128xf32>
    %5 = arith.mulf %3, %3 : vector<8x128xf32>
    %6 = arith.mulf %4, %4 : vector<8x128xf32>
    %7 = arith.addf %5, %6 : vector<8x128xf32>
    %cst_3 = arith.constant 2.500000e+01 : f32
    %8 = vector.broadcast %cst_3 : f32 to vector<8x128xf32>
    %9 = arith.cmpf ogt, %7, %8 : vector<8x128xf32>
    %c0_4 = arith.constant 0 : index
    %c0_5 = arith.constant 0 : index
    %10 = vector.load %arg6[%c0_4, %c0_5] : memref<8x384xf32, #tpu.memory_space<vmem>>, vector<8x128xf32>
    tpu.vector_store %arg6[%c0_4, %c0_5], %0 {strides = array<i32>} : memref<8x384xf32, #tpu.memory_space<vmem>>, vector<8x128xf32>,
    %cst_6 = arith.constant 0.000000e+00 : f32
    %11 = vector.broadcast %cst_6 : f32 to vector<8x128xf32>
    %12 = arith.select %9, %3, %11 : vector<8x128xi1>, vector<8x128xf32>
    %c0_7 = arith.constant 0 : index
    %c128 = arith.constant 128 : index
    %13 = vector.load %arg6[%c0_7, %c128] : memref<8x384xf32, #tpu.memory_space<vmem>>, vector<8x128xf32>
    tpu.vector_store %arg6[%c0_7, %c128], %12 {strides = array<i32>} : memref<8x384xf32, #tpu.memory_space<vmem>>, vector<8x128xf32>,
    %cst_8 = arith.constant 0.000000e+00 : f32
    %14 = vector.broadcast %cst_8 : f32 to vector<8x128xf32>
    %15 = arith.select %9, %4, %14 : vector<8x128xi1>, vector<8x128xf32>
    %c0_9 = arith.constant 0 : index
    %c256 = arith.constant 256 : index
    %16 = vector.load %arg6[%c0_9, %c256] : memref<8x384xf32, #tpu.memory_space<vmem>>, vector<8x128xf32>
    tpu.vector_store %arg6[%c0_9, %c256], %15 {strides = array<i32>} : memref<8x384xf32, #tpu.memory_space<vmem>>, vector<8x128xf32>,
    %c0_10 = arith.constant 0 : index
    %c0_11 = arith.constant 0 : index
    %17 = vector.load %arg6[%c0_10, %c0_11] : memref<8x384xf32, #tpu.memory_space<vmem>>, vector<8x384xf32>
    %c0_12 = arith.constant 0 : index
    %c0_13 = arith.constant 0 : index
    %18 = vector.load %arg3[%c0_12, %c0_13] : memref<384x128xf32, #tpu.memory_space<vmem>>, vector<384x128xf32>
    %cst_14 = arith.constant dense<0.000000e+00> : vector<8x128xf32>
    %19 = tpu.matmul %17, %18, %cst_14 {dimension_numbers = #tpu.dot_dimension_numbers<[1], [0], [0], [1], [0, 0, 1, 1], [], []>} : vector<8x384xf32>, vector<384x128xf32>, vector<8x128xf32> -> vector<8x128xf32>
    %c0_15 = arith.constant 0 : index
    %c0_16 = arith.constant 0 : index
    %20 = vector.load %arg4[%c0_15, %c0_16] : memref<1x128xf32, #tpu.memory_space<vmem>>, vector<1x128xf32>
    %21 = vector.broadcast %20 : vector<1x128xf32> to vector<8x128xf32>
    %22 = arith.addf %19, %21 : vector<8x128xf32>
    %c0_17 = arith.constant 0 : index
    %c0_18 = arith.constant 0 : index
    %23 = vector.load %arg5[%c0_17, %c0_18] : memref<8x128xf32, #tpu.memory_space<vmem>>, vector<8x128xf32>
    tpu.vector_store %arg5[%c0_17, %c0_18], %22 {strides = array<i32>} : memref<8x128xf32, #tpu.memory_space<vmem>>, vector<8x128xf32>,
    return
  }
  func.func @transform_0(%arg0: i32) -> (i32, i32) {
    %c0_i32 = arith.constant 0 : i32
    %c0_i32_0 = arith.constant 0 : i32
    return %arg0, %c0_i32 : i32, i32
  }
  func.func @transform_1(%arg0: i32) -> (i32, i32) {
    %c0_i32 = arith.constant 0 : i32
    %c0_i32_0 = arith.constant 0 : i32
    %c0_i32_1 = arith.constant 0 : i32
    return %c0_i32, %c0_i32_0 : i32, i32
  }
  func.func @transform_2(%arg0: i32) -> (i32, i32) {
    %c0_i32 = arith.constant 0 : i32
    %c0_i32_0 = arith.constant 0 : i32
    %c0_i32_1 = arith.constant 0 : i32
    return %c0_i32, %c0_i32_0 : i32, i32
  }
  func.func @transform_3(%arg0: i32) -> (i32, i32) {
    %c0_i32 = arith.constant 0 : i32
    %c0_i32_0 = arith.constant 0 : i32
    %c0_i32_1 = arith.constant 0 : i32
    return %c0_i32, %c0_i32_0 : i32, i32
  }
  func.func @transform_4(%arg0: i32) -> (i32, i32) {
    %c0_i32 = arith.constant 0 : i32
    %c0_i32_0 = arith.constant 0 : i32
    return %arg0, %c0_i32 : i32, i32
  }
}

</mosaic_0001>

<bundles_post_ra>
// kernel: _apply.1
= control target key start
LH: loop header
LB: loop body
LE: loop exit
PB: predicated region body
PF: predicated region fallthrough
CT: control target
= control target key end

     0   :  { %9 = vsyncpa [#allocation4], 0  ;;  %s610_s0 = inlined_call_operand.vmem [shape: f32[8,128], index: 0, kind: input, shape index: {}]   ;;  %s611_s1 = inlined_call_operand.hbm [shape: f32[128,256], index: 1, kind: input, shape index: {}]   ;;  %s612_s2 = inlined_call_operand.hbm [shape: f32[384,128], index: 2, kind: input, shape index: {}]   ;;  %s613_s3 = inlined_call_operand.vmem [shape: f32[1,128], index: 3, kind: input, shape index: {}]   ;;  %s614_s4 = inlined_call_operand.hbm [shape: f32[8,128], index: 4, kind: output, shape index: {}]  }
   0x1   :  { %10 = vsyncpa [#allocation7], 0 }
   0x2   :  { %11 = vsyncpa [#allocation5], 0  ;;  %s539_s15 = smov [#allocation3]  }
   0x3   :  { %s19_s16 = sshll.u32 %s539_s15, 4  ;;  %s20_s16 = int_to_ptr.vmem [resolvable:$true] %s19_s16 }
   0x4   :  { %s481_s17 = scalar_lea.vmem %s20_s16, 4096  ;;  %p486_p1 = scmp.lt.s32.totalorder %s20_s16, %s20_s16 }
   0x5   :  { %p482_p0 = scmp.ne.s32.totalorder %s20_s16, %s481_s17  ;;  %p487_p2 = scmp.lt.s32.totalorder %s481_s17, %s481_s17 }
   0x7   :  { %p488_p3 = por %p487_p2, %p486_p1 }
   0x9   :  { %p489_p4 = pnand %p488_p3, %p482_p0 }
   0xb   :  { %492 = shalt.err (!%p489_p4)
}
   0xc   :  { %s540_s18 = smov 256   ;;  %s541_s19 = smov 16  }
   0xd   :  { %25 = dma.hbm_to_vmem [thread:$0]  %s611_s1, 4096, %s20_s16, [#allocation4], %s540_s18, %s540_s18, %s541_s19  }
   0xe   :  { %s542_s22 = smov [#allocation6]  }
   0xf   :  { %s31_s23 = sshll.u32 %s542_s22, 4  ;;  %s32_s23 = int_to_ptr.vmem [resolvable:$true] %s31_s23 }
  0x10   :  { %s501_s24 = scalar_lea.vmem %s32_s23, 6144  ;;  %p506_p6 = scmp.lt.s32.totalorder %s32_s23, %s32_s23 }
  0x11   :  { %p502_p5 = scmp.ne.s32.totalorder %s32_s23, %s501_s24  ;;  %p507_p7 = scmp.lt.s32.totalorder %s501_s24, %s501_s24 }
  0x13   :  { %p508_p8 = por %p507_p7, %p506_p6 }
  0x15   :  { %p509_p9 = pnand %p508_p8, %p502_p5 }
  0x17   :  { %512 = shalt.err (!%p509_p9)
}
  0x18   :  { %s543_s25 = smov 128   ;;  %s544_s26 = smov 8  }
  0x19   :  { %37 = dma.hbm_to_vmem [thread:$0]  %s612_s2, 6144, %s32_s23, [#allocation7], %s543_s25, %s543_s25, %s544_s26  }
  0x1a   :  { %533 = dma.done.wait [#allocation4], 4096  }
  0x1b   :  { %534 = vsyncadd [#allocation4], 4294963200 }
  0x1c   :  { %535 = dma.done.wait [#allocation7], 6144  }
  0x1d   :  { %536 = vsyncadd [#allocation7], 4294961152  ;;  %v545_v0 = vmov 0.0   ;;  %v78_v1 = vld [vmem:[#allocation3 + $0xf8] sm:$0xff]  ;;  %v77_v2 = vld [vmem:[#allocation3 + $0xf0] sm:$0xff]  ;;  %vm546_vm0 = vmmov 0  }
  0x1e   :  { %143 = vmatprep.mubr.f32.mxu0 %v545_v0  ;;  %v76_v3 = vld [vmem:[#allocation3 + $0xe8] sm:$0xff]  ;;  %79 = vmatprep.subr.mxu0 %v78_v1  ;;  %v75_v4 = vld [vmem:[#allocation3 + $0xe0] sm:$0xff]  ;;  %v74_v5 = vld [vmem:[#allocation3 + $0xd8] sm:$0xff]  ;;  %s547_s30 = smov [#allocation8]  }
  0x1f   :  { %80 = vmatpush1.msra.mxu0 %v77_v2  ;;  %v73_v6 = vld [vmem:[#allocation3 + $0xd0] sm:$0xff]  ;;  %v72_v7 = vld [vmem:[#allocation3 + $0xc8] sm:$0xff]  ;;  %v71_v8 = vld [vmem:[#allocation3 + $0xc0] sm:$0xff]  ;;  %s364_s5 = sshll.u32 %s547_s30, 4  ;;  %s365_s5 = int_to_ptr.vmem [resolvable:$true] %s364_s5 }
  0x20   :  { %81 = vmatprep.subr.mxu0 %v76_v3  ;;  %v70_v9 = vld [vmem:[#allocation3 + $0xb8] sm:$0xff]  ;;  %v69_v10 = vld [vmem:[#allocation3 + $0xb0] sm:$0xff]  ;;  %v68_v11 = vld [vmem:[#allocation3 + $0xa8] sm:$0xff]  ;;  %s513_s6 = scalar_lea.vmem %s365_s5, 128  ;;  %p518_p11 = scmp.lt.s32.totalorder %s365_s5, %s365_s5 }
  0x21   :  { %82 = vmatpush1.msra.mxu0 %v75_v4  ;;  %v67_v12 = vld [vmem:[#allocation3 + $0xa0] sm:$0xff]  ;;  %v66_v13 = vld [vmem:[#allocation3 + $0x98] sm:$0xff]  ;;  %v65_v14 = vld [vmem:[#allocation3 + $0x90] sm:$0xff]  ;;  %p514_p10 = scmp.ne.s32.totalorder %s365_s5, %s513_s6  ;;  %p519_p12 = scmp.lt.s32.totalorder %s513_s6, %s513_s6 }
  0x22   :  { %83 = vmatprep.subr.mxu0 %v74_v5  ;;  %v193_v15 = vld [vmem:[#allocation6 + $0xf8] sm:$0xff]  ;;  %v64_v17 = vld [vmem:[#allocation3 + $0x88] sm:$0xff]  ;;  %v192_v18 = vld [vmem:[#allocation6 + $0xf0] sm:$0xff] }
  0x23   :  { %84 = vmatpush1.msra.mxu0 %v73_v6  ;;  %v177_v16 = vld [vmem:[#allocation6 + $0x78] sm:$0xff]  ;;  %377 = vmatprep.subr.mxu1 %v193_v15  ;;  %v176_v19 = vld [vmem:[#allocation6 + $0x70] sm:$0xff]  ;;  %v63_v20 = vld [vmem:[#allocation3 + $0x80] sm:$0xff]  ;;  %p520_p13 = por %p519_p12, %p518_p11 }
  0x24   :  { %85 = vmatprep.subr.mxu0 %v72_v7  ;;  %378 = vmatpush3.msra.mxu1 %v177_v16  ;;  %v191_v21 = vld [vmem:[#allocation6 + $0xe8] sm:$0xff]  ;;  %v62_v22 = vld [vmem:[#allocation3 + $0x78] sm:$0xff]  ;;  %v61_v24 = vld [vmem:[#allocation3 + $0x70] sm:$0xff] }
  0x25   :  { %86 = vmatpush1.msra.mxu0 %v71_v8  ;;  %379 = vmatprep.subr.mxu1 %v192_v18  ;;  %v175_v23 = vld [vmem:[#allocation6 + $0x68] sm:$0xff]  ;;  %v190_v25 = vld [vmem:[#allocation6 + $0xe0] sm:$0xff]  ;;  %v189_v29 = vld [vmem:[#allocation6 + $0xd8] sm:$0xff]  ;;  %p521_p0 = pnand %p520_p13, %p514_p10 }
  0x26   :  { %87 = vmatprep.subr.mxu0 %v70_v9  ;;  %380 = vmatpush3.msra.mxu1 %v176_v19  ;;  %v60_v26 = vld [vmem:[#allocation3 + $0x68] sm:$0xff]  ;;  %v174_v27 = vld [vmem:[#allocation6 + $0x60] sm:$0xff]  ;;  %v58_v30 = vld [vmem:[#allocation3 + $0x58] sm:$0xff] }
  0x27   :  { %88 = vmatpush1.msra.mxu0 %v69_v10  ;;  %381 = vmatprep.subr.mxu1 %v191_v21  ;;  %v59_v28 = vld [vmem:[#allocation3 + $0x60] sm:$0xff]  ;;  %v173_v31 = vld [vmem:[#allocation6 + $0x58] sm:$0xff]  ;;  %v57_v32 = vld [vmem:[#allocation3 + $0x50] sm:$0xff] }
  0x28   :  { %89 = vmatprep.subr.mxu0 %v68_v11  ;;  %382 = vmatpush3.msra.mxu1 %v175_v23  ;;  %v188_v33 = vld [vmem:[#allocation6 + $0xd0] sm:$0xff]  ;;  %v56_v34 = vld [vmem:[#allocation3 + $0x48] sm:$0xff]  ;;  %v55_v36 = vld [vmem:[#allocation3 + $0x40] sm:$0xff] }
  0x29   :  { %90 = vmatpush1.msra.mxu0 %v67_v12  ;;  %383 = vmatprep.subr.mxu1 %v190_v25  ;;  %v172_v35 = vld [vmem:[#allocation6 + $0x50] sm:$0xff]  ;;  %v187_v37 = vld [vmem:[#allocation6 + $0xc8] sm:$0xff]  ;;  %v54_v38 = vld [vmem:[#allocation3 + $0x38] sm:$0xff] }
  0x2a   :  { %91 = vmatprep.subr.mxu0 %v66_v13  ;;  %384 = vmatpush3.msra.mxu1 %v174_v27  ;;  %v171_v39 = vld [vmem:[#allocation6 + $0x48] sm:$0xff]  ;;  %v53_v40 = vld [vmem:[#allocation3 + $0x30] sm:$0xff]  ;;  %v186_v41 = vld [vmem:[#allocation6 + $0xc0] sm:$0xff] }
  0x2b   :  { %92 = vmatpush1.msra.mxu0 %v65_v14  ;;  %385 = vmatprep.subr.mxu1 %v189_v29  ;;  %v52_v42 = vld [vmem:[#allocation3 + $0x28] sm:$0xff]  ;;  %v170_v43 = vld [vmem:[#allocation6 + $0x40] sm:$0xff]  ;;  %v185_v45 = vld [vmem:[#allocation6 + $0xb8] sm:$0xff] }
  0x2c   :  { %93 = vmatprep.subr.mxu0 %v64_v17  ;;  %386 = vmatpush3.msra.mxu1 %v173_v31  ;;  %v51_v44 = vld [vmem:[#allocation3 + $0x20] sm:$0xff]  ;;  %v50_v46 = vld [vmem:[#allocation3 + $0x18] sm:$0xff]  ;;  %v49_v48 = vld [vmem:[#allocation3 + $0x10] sm:$0xff] }
  0x2d   :  { %94 = vmatpush1.msra.mxu0 %v63_v20  ;;  %387 = vmatprep.subr.mxu1 %v188_v33  ;;  %v169_v47 = vld [vmem:[#allocation6 + $0x38] sm:$0xff]  ;;  %v184_v49 = vld [vmem:[#allocation6 + $0xb0] sm:$0xff]  ;;  %v48_v50 = vld [vmem:[#allocation3 + $0x8] sm:$0xff] }
  0x2e   :  { %95 = vmatprep.subr.mxu0 %v62_v22  ;;  %388 = vmatpush3.msra.mxu1 %v172_v35  ;;  %v168_v51 = vld [vmem:[#allocation6 + $0x30] sm:$0xff]  ;;  %v47_v52 = vld [vmem:[#allocation3] sm:$0xff]  ;;  %v183_v53 = vld [vmem:[#allocation6 + $0xa8] sm:$0xff] }
  0x2f   :  { %96 = vmatpush1.msra.mxu0 %v61_v24  ;;  %389 = vmatprep.subr.mxu1 %v187_v37  ;;  %v583_v54 = vld [vmem:[%s610_s0] sm:$0xff]  ;;  %v209_v55 = vld [vmem:[#allocation6 + $0x178] sm:$0xff]  ;;  %v167_v56 = vld [vmem:[#allocation6 + $0x28] sm:$0xff] }
  0x30   :  { %97 = vmatprep.subr.mxu0 %v60_v26  ;;  %390 = vmatpush3.msra.mxu1 %v171_v39  ;;  %v182_v57 = vld [vmem:[#allocation6 + $0xa0] sm:$0xff]  ;;  %v208_v58 = vld [vmem:[#allocation6 + $0x170] sm:$0xff]  ;;  %v207_v59 = vld [vmem:[#allocation6 + $0x168] sm:$0xff] }
  0x31   :  { %98 = vmatpush1.msra.mxu0 %v59_v28  ;;  %391 = vmatprep.subr.mxu1 %v186_v41  ;;  %v206_v60 = vld [vmem:[#allocation6 + $0x160] sm:$0xff]  ;;  %v205_v61 = vld [vmem:[#allocation6 + $0x158] sm:$0xff]  ;;  %v204_v62 = vld [vmem:[#allocation6 + $0x150] sm:$0xff] }
  0x32   :  { %99 = vmatprep.subr.mxu0 %v58_v30  ;;  %392 = vmatpush3.msra.mxu1 %v170_v43  ;;  %v203_v63 = vld [vmem:[#allocation6 + $0x148] sm:$0xff]  ;;  %v202_v1 = vld [vmem:[#allocation6 + $0x140] sm:$0xff]  ;;  %v201_v2 = vld [vmem:[#allocation6 + $0x138] sm:$0xff] }
  0x33   :  { %100 = vmatpush1.msra.mxu0 %v57_v32  ;;  %393 = vmatprep.subr.mxu1 %v185_v45  ;;  %v200_v3 = vld [vmem:[#allocation6 + $0x130] sm:$0xff]  ;;  %v199_v4 = vld [vmem:[#allocation6 + $0x128] sm:$0xff]  ;;  %v198_v5 = vld [vmem:[#allocation6 + $0x120] sm:$0xff] }
  0x34   :  { %101 = vmatprep.subr.mxu0 %v56_v34  ;;  %394 = vmatpush3.msra.mxu1 %v169_v47  ;;  %v166_v6 = vld [vmem:[#allocation6 + $0x20] sm:$0xff]  ;;  %v181_v7 = vld [vmem:[#allocation6 + $0x98] sm:$0xff]  ;;  %v180_v10 = vld [vmem:[#allocation6 + $0x90] sm:$0xff] }
  0x35   :  { %102 = vmatpush1.msra.mxu0 %v55_v36  ;;  %395 = vmatprep.subr.mxu1 %v184_v49  ;;  %v197_v8 = vld [vmem:[#allocation6 + $0x118] sm:$0xff]  ;;  %v196_v11 = vld [vmem:[#allocation6 + $0x110] sm:$0xff]  ;;  %v179_v13 = vld [vmem:[#allocation6 + $0x88] sm:$0xff] }
  0x36   :  { %103 = vmatprep.subr.mxu0 %v54_v38  ;;  %396 = vmatpush3.msra.mxu1 %v168_v51  ;;  %v165_v9 = vld [vmem:[#allocation6 + $0x18] sm:$0xff]  ;;  %v164_v12 = vld [vmem:[#allocation6 + $0x10] sm:$0xff]  ;;  %v195_v14 = vld [vmem:[#allocation6 + $0x108] sm:$0xff] }
  0x37   :  { %104 = vmatpush1.msra.mxu0 %v53_v40  ;;  %397 = vmatprep.subr.mxu1 %v183_v53  ;;  %v163_v15 = vld [vmem:[#allocation6 + $0x8] sm:$0xff]  ;;  %v178_v16 = vld [vmem:[#allocation6 + $0x80] sm:$0xff] }
  0x38   :  { %105 = vmatprep.subr.mxu0 %v52_v42  ;;  %398 = vmatpush3.msra.mxu1 %v167_v56  ;;  %v194_v17 = vld [vmem:[#allocation6 + $0x100] sm:$0xff] }
  0x39   :  { %106 = vmatpush1.msra.mxu0 %v51_v44  ;;  %399 = vmatprep.subr.mxu1 %v182_v57  ;;  %v162_v18 = vld [vmem:[#allocation6] sm:$0xff] }
  0x3a   :  { %107 = vmatprep.subr.mxu0 %v50_v46  ;;  %400 = vmatpush3.msra.mxu1 %v166_v6  ;;  %v374_v27 = vld [vmem:[%s613_s3] ss:$0 sm:$0xff] }
  0x3b   :  { %108 = vmatpush1.msra.mxu0 %v49_v48  ;;  %401 = vmatprep.subr.mxu1 %v181_v7 }
  0x3c   :  { %109 = vmatprep.subr.mxu0 %v48_v50  ;;  %402 = vmatpush3.msra.mxu1 %v165_v9 }
  0x3d   :  { %110 = vmatpush1.msra.mxu0 %v47_v52  ;;  %403 = vmatprep.subr.mxu1 %v180_v10 }
  0x3e   :  { %144 = vmatmul.mubr.f32.vlgmr.msra.gmra.mxu0 %v583_v54  ;;  %429 = vmatprep.subr.mxu0 %v545_v0 }
  0x3f   :  { %430 = vmatpush3.msra.mxu0 %v209_v55  ;;  %404 = vmatpush3.msra.mxu1 %v164_v12 }
  0x40   :  { %431 = vmatprep.subr.mxu0 %v545_v0  ;;  %405 = vmatprep.subr.mxu1 %v179_v13 }
  0x41   :  { %432 = vmatpush3.msra.mxu0 %v208_v58  ;;  %406 = vmatpush3.msra.mxu1 %v163_v15 }
  0x42   :  { %433 = vmatprep.subr.mxu0 %v545_v0  ;;  %407 = vmatprep.subr.mxu1 %v178_v16 }
  0x43   :  { %434 = vmatpush3.msra.mxu0 %v207_v59  ;;  %461 = vmatprep.mubr.msk.f32.mxu0 %vm546_vm0, %v545_v0 }
  0x44   :  { %435 = vmatprep.subr.mxu0 %v545_v0  ;;  %408 = vmatpush3.msra.mxu1 %v162_v18 }
  0x45   :  { %436 = vmatpush3.msra.mxu0 %v206_v60 }
  0x46   :  { %437 = vmatprep.subr.mxu0 %v545_v0 }
  0x47   :  { %438 = vmatpush3.msra.mxu0 %v205_v61 }
  0x48   :  { %439 = vmatprep.subr.mxu0 %v545_v0 }
  0x49   :  { %440 = vmatpush3.msra.mxu0 %v204_v62 }
  0x4a   :  { %441 = vmatprep.subr.mxu0 %v545_v0 }
  0x4b   :  { %442 = vmatpush3.msra.mxu0 %v203_v63 }
  0x4c   :  { %443 = vmatprep.subr.mxu0 %v545_v0 }
  0x4d   :  { %444 = vmatpush3.msra.mxu0 %v202_v1 }
  0x4e   :  { %445 = vmatprep.subr.mxu0 %v545_v0 }
  0x4f   :  { %446 = vmatpush3.msra.mxu0 %v201_v2 }
  0x50   :  { %447 = vmatprep.subr.mxu0 %v545_v0 }
  0x51   :  { %448 = vmatpush3.msra.mxu0 %v200_v3 }
  0x52   :  { %449 = vmatprep.subr.mxu0 %v545_v0 }
  0x53   :  { %450 = vmatpush3.msra.mxu0 %v199_v4 }
  0x54   :  { %451 = vmatprep.subr.mxu0 %v545_v0 }
  0x55   :  { %452 = vmatpush3.msra.mxu0 %v198_v5 }
  0x56   :  { %453 = vmatprep.subr.mxu0 %v545_v0 }
  0x57   :  { %454 = vmatpush3.msra.mxu0 %v197_v8 }
  0x58   :  { %455 = vmatprep.subr.mxu0 %v545_v0 }
  0x59   :  { %456 = vmatpush3.msra.mxu0 %v196_v11 }
  0x5a   :  { %457 = vmatprep.subr.mxu0 %v545_v0 }
  0x5b   :  { %458 = vmatpush3.msra.mxu0 %v195_v14 }
  0x5c   :  { %459 = vmatprep.subr.mxu0 %v545_v0 }
  0x5d   :  { %460 = vmatpush3.msra.mxu0 %v194_v17 }
  0xfe   :  { %v145_v19 = vpop.f32.mrf.mxu0 }
  0xff   :  { %v150_v21 = vmul.f32 %v145_v19, %v145_v19 }
 0x100   :  { %v147_v20 = vpop.f32.mrf.mxu0 }
 0x101   :  { %v151_v22 = vmul.f32 %v147_v20, %v147_v20 }
 0x103   :  { %v152_v23 = vadd.f32 %v151_v22, %v150_v21 }
 0x105   :  { %vm153_vm1 = vcmp.gt.f32.partialorder %v152_v23, 25.0 }
 0x106   :  { %375 = vmatprep.mubr.msk.f32.mxu1 %vm153_vm1, %v145_v19  ;;  %462 = vmatmul.mubr.msk.f32.vlgmr.msra.gmra.mxu0 %vm153_vm1, %v147_v20 }
 0x107   :  { %282 = vmatmul.mubr.f32.vlgmr.msra.gmra.mxu1 %v583_v54 }
 0x1c6   :  { %v353_v24 = vpop.f32.mrf.mxu0 }
 0x1c7   :  { %v409_v25 = vpop.f32.mrf.mxu1 }
 0x1c8   :  { %v463_v26 = vpop.f32.mrf.mxu0 }
 0x1c9   :  { %v410_v28 = vpop.f32.mrf.mxu1 }
 0x1ca   :  { %v411_v0 = vadd.f32 %v410_v28, %v409_v25 }
 0x1cc   :  { %v284_v29 = vadd.f32 %v411_v0, %v374_v27 }
 0x1ce   :  { %v354_v30 = vadd.f32 %v353_v24, %v284_v29 }
 0x1d0   :  { %357 = vst [vmem:[#allocation8] sm:$0xff] %v354_v30 }
 0x1d1   :  { %524 = shalt.err (!%p521_p0)
}
 0x1d2   :  { %367 = dma.vmem_to_hbm [thread:$0]  %s365_s5, 128, %s614_s4, [#allocation5]  }
 0x1d3   :  { %537 = dma.done.wait [#allocation5], 128  }
 0x1d4   :  { %538 = vsyncadd [#allocation5], 4294967168 }
 0x1d5   :  { %371 = vsyncpa [#allocation4], 1 }
 0x1d6   :  { %372 = vsyncpa [#allocation7], 1 }
 0x1d7   :  { %373 = vsyncpa [#allocation5], 1 }

</bundles_post_ra>
